<compile_context>
chip_gen: v5e
topology: v5e:2x2
jax: 0.10.0
libtpu: 0.0.40
codegen_flags: <defaults>
</compile_context>

<pallas_src>
import jax
import jax.numpy as jnp
from jax.experimental import pallas as pl
from jax.experimental.pallas import tpu as pltpu

_VMEM_LIMIT = 64 * 1024 * 1024


# ----------------------------------------------------------------------------
# Kernel 1: implicit filter MLP (HyenaFilter on the sinusoidal table), channel-
# major: out[(order*E + c), t] = filter_order(t)[c].  bf16 matmuls, f32 accum.
# Grid over output-row blocks ("parallel").
# ----------------------------------------------------------------------------
def _filter_mlp_kernel(tT_ref, w1_ref, b1_ref, w2_ref, b2_ref, o_ref):
    hid = jnp.sin(jnp.dot(w1_ref[...], tT_ref[...],
                          preferred_element_type=jnp.float32) + b1_ref[...])
    o_ref[...] = jnp.dot(w2_ref[...], hid.astype(jnp.bfloat16),
                         preferred_element_type=jnp.float32) + b2_ref[...]


# ----------------------------------------------------------------------------
# Kernel 2 (fused hyena core): per channel block,
#   (a) HyenaProjection: one (e_blk, E) x (E, R) MXU matmul per stream,
#   (b) depthwise causal K-tap short conv via shifted reads of a zero-padded row,
#   (c) Hyena recurrence: per order, a causal Toeplitz long conv on the MXU.
#       The per-channel Toeplitz T^t[c, k, q] = h[c, q - k] (0 above the
#       diagonal) is built on-chip from the filter row: row k is a static
#       shifted window of [0...0 | h], so causality needs no mask.
#   (d) per-order skip B_i * u applied in f32, final gate stream multiply.
# Output v is a lane-dense bf16 (e_blk, B, L) block (time on lanes).
# ----------------------------------------------------------------------------
def _hyena_core_kernel(x_ref, wp_ref, bp_ref, cw_ref, cb_ref, h_ref, bsk_ref,
                       v_ref, st_ref, toep_ref):
    n_streams, eb, nb, L = st_ref.shape          # streams = n_order + 1
    n_order = n_streams - 1
    K = cw_ref.shape[-1]
    x = x_ref[...]                               # (E, R) bf16, R = B*L (b-major)

    # --- projection + short conv (one matmul per stream; shifts are lane reads) ---
    for s in range(n_streams):
        z = jnp.dot(wp_ref[s], x, preferred_element_type=jnp.float32) + bp_ref[s]
        cw = cw_ref[s]                           # (eb, K)  causal taps (flipped)
        cb = cb_ref[s]                           # (eb, 1)
        for b in range(nb):                      # tiny static batch loop
            zb = z[:, b * L:(b + 1) * L]         # (eb, L)
            zp = jnp.concatenate(
                [jnp.zeros((eb, K - 1), jnp.float32), zb], axis=-1)
            acc = jnp.zeros((eb, L), jnp.float32) + cb
            for j in range(K):                   # K is tiny and static
                acc = acc + cw[:, j:j + 1] * zp[:, K - 1 - j:K - 1 - j + L]
            st_ref[s, :, b, :] = acc             # stage streams in VMEM (f32)

    # --- recurrence: v <- LongConv(v * x_i) ; long conv = Toeplitz matmul ---
    v = st_ref[n_order]                          # value stream, (eb, B, L) f32
    for i in range(n_order - 1):                 # small static loop (N-1 steps)
        u = v * st_ref[n_order - 1 - i]          # f32
        hflt = h_ref[i]                          # (eb, L) f32 filter taps
        hpad = jnp.concatenate([jnp.zeros_like(hflt), hflt], axis=-1)  # (eb, 2L)
        # On-chip Toeplitz: row k is the window hpad[:, L-k : 2L-k], i.e.
        # T^t[c, k, q] = h[c, q-k] for q>=k and exactly 0 for q<k (no mask).
        # TODO(synk): at production L, replace this per-row loop with a
        # block-causal (TQ, TK) grid + strided pltpu.roll construction.
        for k in range(L):
            toep_ref[:, k, :] = hpad[:, L - k:2 * L - k]
        tmat = toep_ref[...].astype(jnp.bfloat16)            # (eb, L, L)
        y = jnp.einsum('cbk,ckq->cbq', u.astype(jnp.bfloat16), tmat,
                       preferred_element_type=jnp.float32)   # time on lanes
        v = y + bsk_ref[i] * u                   # f32 skip B_i * u
    v = v * st_ref[0]
    v_ref[...] = v.astype(v_ref.dtype)           # bf16 lane-dense store


# ----------------------------------------------------------------------------
# Kernel 3: gate (sigmoid on the EUP) + output projection, channel-major; grid
# over (output-channel blocks, R tiles) — at production sizes the R-tile axis
# carries the parallelism and eo_blk should be E (no gate recompute).
# ----------------------------------------------------------------------------
def _gate_out_kernel(x_ref, v_ref, wg_ref, bg_ref, wo_ref, bo_ref, out_ref):
    gate = jax.nn.sigmoid(jnp.dot(wg_ref[...], x_ref[...],
                                  preferred_element_type=jnp.float32) + bg_ref[...])
    gv = (gate * v_ref[...].astype(jnp.float32)).astype(jnp.bfloat16)
    out_ref[...] = jnp.dot(wo_ref[...], gv,
                           preferred_element_type=jnp.float32) + bo_ref[...]


# ----------------------------------------------------------------------------
# Plain-JAX glue: parameters, positional-encoding table, layout plumbing.
# ----------------------------------------------------------------------------
def sinusoidal_positional_encoding(positions, emb_dim):
    half = emb_dim // 2
    i = jnp.arange(half, dtype=jnp.float32)
    inv_freq = jnp.exp(-jnp.log(10000.0) * (2.0 * i / emb_dim))
    ang = positions[:, None] * inv_freq[None, :]
    pe = jnp.zeros((positions.shape[0], emb_dim), jnp.float32)
    pe = pe.at[:, 0::2].set(jnp.sin(ang)).at[:, 1::2].set(jnp.cos(ang))
    return pe


def init_params(key, emb_dim, n_order, kernel_size, num_heads, max_len):
    head_dim = emb_dim // num_heads
    ks = jax.random.split(key, 10)

    def u(k, shape, fan_in):
        bound = 1.0 / float(fan_in) ** 0.5
        return jax.random.uniform(k, shape, jnp.float32, -bound, bound)

    pos = jnp.arange(0, 2 * max_len + 1, dtype=jnp.float32)
    return dict(
        # HyenaProjection
        Wp=u(ks[0], (emb_dim, (n_order + 1) * emb_dim), emb_dim),
        bp=jnp.zeros((1, (n_order + 1) * emb_dim), jnp.float32),
        conv_w=u(ks[1], ((n_order + 1) * emb_dim, kernel_size), kernel_size),
        conv_b=jnp.zeros((1, (n_order + 1) * emb_dim), jnp.float32),
        # RotaryHyenaFilter / HyenaFilter
        t=sinusoidal_positional_encoding(pos, emb_dim),
        Wf1=u(ks[2], (emb_dim, emb_dim), emb_dim),
        bf1=u(ks[3], (1, emb_dim), emb_dim),
        Wf2=u(ks[4], (emb_dim, n_order * emb_dim), emb_dim),
        bf2=u(ks[5], (1, n_order * emb_dim), emb_dim),
        # ReadwiseHyena
        B=u(ks[6], (n_order, 1, head_dim, 1), head_dim),
        Wg=u(ks[7], (emb_dim, emb_dim), emb_dim),
        bg=u(ks[8], (1, emb_dim), emb_dim),
        Wout=u(ks[9], (emb_dim, emb_dim), emb_dim),
        bout=jnp.zeros((1, emb_dim), jnp.float32),
    )


def readwise_hyena_forward(params, embeddings, positions, *,
                           n_order, num_heads, kernel_size):
    del positions  # TODO(synk): internal use of read_positions is not visible.
    Bsz, L, E = embeddings.shape
    H = num_heads
    N, K = n_order, kernel_size
    R = Bsz * L                                  # lane axis: col = b*L + t

    e_blk = E // 2 if (E % 2 == 0 and (E // 2) % 8 == 0) else E
    n_filt_rows = (N - 1) * E                    # only the filters actually used
    f_blk = (n_filt_rows // 2
             if (n_filt_rows % 2 == 0 and (n_filt_rows // 2) % 8 == 0)
             else n_filt_rows)

    # ---- kernel 1: filter MLP, channel-major, only the first L positions and
    #      only the (N-1)*E filter columns consumed by the recurrence ----
    tT = params["t"][:L].T.astype(jnp.bfloat16)                    # (E, L)
    w1T = params["Wf1"].T.astype(jnp.bfloat16)                     # (E, E)
    b1c = params["bf1"].reshape(E, 1)                              # (E, 1)
    w2uT = params["Wf2"][:, :n_filt_rows].T.astype(jnp.bfloat16)   # ((N-1)E, E)
    b2uc = params["bf2"][:, :n_filt_rows].reshape(n_filt_rows, 1)
    h_flt = pl.pallas_call(
        _filter_mlp_kernel,
        grid=(n_filt_rows // f_blk,),
        in_specs=[
            pl.BlockSpec((E, L), lambda i: (0, 0)),
            pl.BlockSpec((E, E), lambda i: (0, 0)),
            pl.BlockSpec((E, 1), lambda i: (0, 0)),
            pl.BlockSpec((f_blk, E), lambda i: (i, 0)),
            pl.BlockSpec((f_blk, 1), lambda i: (i, 0)),
        ],
        out_specs=pl.BlockSpec((f_blk, L), lambda i: (i, 0)),
        out_shape=jax.ShapeDtypeStruct((n_filt_rows, L), jnp.float32),
        compiler_params=pltpu.CompilerParams(
            dimension_semantics=("parallel",), vmem_limit_bytes=_VMEM_LIMIT),
    )(tT, w1T, b1c, w2uT, b2uc)
    h_flt = h_flt.reshape(N - 1, E, L)           # free contiguous row split

    # ---- channel-major activation slab: (E, R), col = b*L + t (time on lanes) ----
    x_t = jnp.transpose(embeddings, (2, 0, 1)).reshape(E, R).astype(jnp.bfloat16)

    # ---- weight layout plumbing (tiny, O(E^2); at production pre-transpose once) ----
    wp_r = params["Wp"].T.reshape(N + 1, E, E).astype(jnp.bfloat16)
    bp_r = params["bp"].reshape(N + 1, E, 1)
    cw_r = params["conv_w"][:, ::-1].reshape(N + 1, E, K)          # causal taps
    cb_r = params["conv_b"].reshape(N + 1, E, 1)
    # B skip per channel (c = head*head_dim + d), kept in f32
    bsk = jnp.tile(params["B"][:N - 1, 0, :, 0], (1, H)).reshape(N - 1, E, 1, 1)

    # ---- kernel 2: fused projection + short conv + recurrence, grid over
    #      channel blocks ("parallel", >=2 steps) ----
    v_cbl = pl.pallas_call(
        _hyena_core_kernel,
        grid=(E // e_blk,),
        in_specs=[
            pl.BlockSpec((E, R), lambda i: (0, 0)),                 # x (resident)
            pl.BlockSpec((N + 1, e_blk, E), lambda i: (0, i, 0)),   # Wp rows
            pl.BlockSpec((N + 1, e_blk, 1), lambda i: (0, i, 0)),   # bp
            pl.BlockSpec((N + 1, e_blk, K), lambda i: (0, i, 0)),   # conv w
            pl.BlockSpec((N + 1, e_blk, 1), lambda i: (0, i, 0)),   # conv b
            pl.BlockSpec((N - 1, e_blk, L), lambda i: (0, i, 0)),   # filters
            pl.BlockSpec((N - 1, e_blk, 1, 1), lambda i: (0, i, 0, 0)),  # B skip
        ],
        out_specs=pl.BlockSpec((e_blk, Bsz, L), lambda i: (i, 0, 0)),
        out_shape=jax.ShapeDtypeStruct((E, Bsz, L), jnp.bfloat16),  # bf16 intermediate
        scratch_shapes=[
            pltpu.VMEM((N + 1, e_blk, Bsz, L), jnp.float32),        # staged streams
            pltpu.VMEM((e_blk, L, L), jnp.float32),                 # Toeplitz tile
        ],
        compiler_params=pltpu.CompilerParams(
            dimension_semantics=("parallel",), vmem_limit_bytes=_VMEM_LIMIT),
    )(x_t, wp_r, bp_r, cw_r, cb_r, h_flt, bsk)
    v_t = v_cbl.reshape(E, R)                    # free contiguous flatten

    # ---- kernel 3: gate + output projection ----
    wg_t = params["Wg"].T.astype(jnp.bfloat16)
    bg_c = params["bg"].reshape(E, 1)
    wo_t = params["Wout"].T.astype(jnp.bfloat16)
    bo_c = params["bout"].reshape(E, 1)
    eo_blk = e_blk
    r_tile = 256 if (R % 256 == 0) else R        # lane tiles at production R
    out_t = pl.pallas_call(
        _gate_out_kernel,
        grid=(E // eo_blk, R // r_tile),
        in_specs=[
            pl.BlockSpec((E, r_tile), lambda i, j: (0, j)),         # x (channel-major)
            pl.BlockSpec((E, r_tile), lambda i, j: (0, j)),         # v (bf16)
            pl.BlockSpec((E, E), lambda i, j: (0, 0)),              # Wg^T
            pl.BlockSpec((E, 1), lambda i, j: (0, 0)),              # bg
            pl.BlockSpec((eo_blk, E), lambda i, j: (i, 0)),         # Wout^T rows
            pl.BlockSpec((eo_blk, 1), lambda i, j: (i, 0)),         # bout
        ],
        out_specs=pl.BlockSpec((eo_blk, r_tile), lambda i, j: (i, j)),
        out_shape=jax.ShapeDtypeStruct((E, R), jnp.float32),
        compiler_params=pltpu.CompilerParams(
            dimension_semantics=("parallel", "parallel"),
            vmem_limit_bytes=_VMEM_LIMIT),
    )(x_t, v_t, wg_t, bg_c, wo_t, bo_c)

    # Back to (B, L, E).  TODO(synk): at production, accept/emit channel-major at
    # the module boundary (or fold this transpose into kernel 3) to avoid the
    # two whole-activation XLA transpose passes.
    return jnp.transpose(out_t.reshape(E, Bsz, L), (1, 2, 0))


if __name__ == "__main__":
    EMB_DIM, N_ORDER, KERNEL_SIZE, NUM_HEADS, MAX_LEN = 32, 3, 3, 4, 100
    BATCH, SEQ = 2, 8

    key = jax.random.PRNGKey(0)
    k_par, k_emb = jax.random.split(key, 2)
    params = init_params(k_par, EMB_DIM, N_ORDER, KERNEL_SIZE, NUM_HEADS, MAX_LEN)

    embeddings = jax.random.normal(k_emb, (BATCH, SEQ, EMB_DIM), jnp.float32)
    positions = jnp.tile(jnp.arange(SEQ, dtype=jnp.int32)[None, :], (BATCH, 1))

    out = readwise_hyena_forward(params, embeddings, positions,
                                 n_order=N_ORDER, num_heads=NUM_HEADS,
                                 kernel_size=KERNEL_SIZE)
    out = jax.block_until_ready(out)
    assert out.shape == (BATCH, SEQ, EMB_DIM)
    assert bool(jnp.all(jnp.isfinite(out)))
    print("KERNEL_OK")
</pallas_src>

<mosaic_0001>
module attributes {stable_mosaic.version = 11 : i64} {
  func.func @_filter_mlp_kernel(%arg0: i32, %arg1: memref<32x8xbf16, #tpu.memory_space<vmem>>, %arg2: memref<32x32xbf16, #tpu.memory_space<vmem>>, %arg3: memref<32x1xf32, #tpu.memory_space<vmem>>, %arg4: memref<32x32xbf16, #tpu.memory_space<vmem>>, %arg5: memref<32x1xf32, #tpu.memory_space<vmem>>, %arg6: memref<32x8xf32, #tpu.memory_space<vmem>>) attributes {dimension_semantics = [#tpu.dimension_semantics<parallel>], iteration_bounds = array<i64: 2>, scalar_prefetch = 0 : i64, scratch_operands = 0 : i64, tpu.core_type = #tpu.core_type<tc>, window_params = [{pipeline_mode = #tpu.pipeline_mode<synchronous>, transform_indices = @transform_0, window_bounds = array<i64: 32, 8>}, {pipeline_mode = #tpu.pipeline_mode<synchronous>, transform_indices = @transform_1, window_bounds = array<i64: 32, 32>}, {pipeline_mode = #tpu.pipeline_mode<synchronous>, transform_indices = @transform_2, window_bounds = array<i64: 32, 1>}, {transform_indices = @transform_3, window_bounds = array<i64: 32, 32>}, {transform_indices = @transform_4, window_bounds = array<i64: 32, 1>}, {transform_indices = @transform_5, window_bounds = array<i64: 32, 8>}]} {
    %c0 = arith.constant 0 : index
    %c0_0 = arith.constant 0 : index
    %0 = vector.load %arg2[%c0, %c0_0] : memref<32x32xbf16, #tpu.memory_space<vmem>>, vector<32x32xbf16>
    %c0_1 = arith.constant 0 : index
    %c0_2 = arith.constant 0 : index
    %1 = vector.load %arg1[%c0_1, %c0_2] : memref<32x8xbf16, #tpu.memory_space<vmem>>, vector<32x8xbf16>
    %cst = arith.constant dense<0.000000e+00> : vector<32x8xf32>
    %2 = tpu.matmul %0, %1, %cst {dimension_numbers = #tpu.dot_dimension_numbers<[1], [0], [0], [1], [0, 0, 1, 1], [], []>} : vector<32x32xbf16>, vector<32x8xbf16>, vector<32x8xf32> -> vector<32x8xf32>
    %c0_3 = arith.constant 0 : index
    %c0_4 = arith.constant 0 : index
    %3 = vector.load %arg3[%c0_3, %c0_4] : memref<32x1xf32, #tpu.memory_space<vmem>>, vector<32x1xf32>
    %4 = vector.broadcast %3 : vector<32x1xf32> to vector<32x8xf32>
    %5 = arith.addf %2, %4 : vector<32x8xf32>
    %6 = math.sin %5 : vector<32x8xf32>
    %c0_5 = arith.constant 0 : index
    %c0_6 = arith.constant 0 : index
    %7 = vector.load %arg4[%c0_5, %c0_6] : memref<32x32xbf16, #tpu.memory_space<vmem>>, vector<32x32xbf16>
    %8 = arith.truncf %6 : vector<32x8xf32> to vector<32x8xbf16>
    %cst_7 = arith.constant dense<0.000000e+00> : vector<32x8xf32>
    %9 = tpu.matmul %7, %8, %cst_7 {dimension_numbers = #tpu.dot_dimension_numbers<[1], [0], [0], [1], [0, 0, 1, 1], [], []>} : vector<32x32xbf16>, vector<32x8xbf16>, vector<32x8xf32> -> vector<32x8xf32>
    %c0_8 = arith.constant 0 : index
    %c0_9 = arith.constant 0 : index
    %10 = vector.load %arg5[%c0_8, %c0_9] : memref<32x1xf32, #tpu.memory_space<vmem>>, vector<32x1xf32>
    %11 = vector.broadcast %10 : vector<32x1xf32> to vector<32x8xf32>
    %12 = arith.addf %9, %11 : vector<32x8xf32>
    %c0_10 = arith.constant 0 : index
    %c0_11 = arith.constant 0 : index
    %13 = vector.load %arg6[%c0_10, %c0_11] : memref<32x8xf32, #tpu.memory_space<vmem>>, vector<32x8xf32>
    tpu.vector_store %arg6[%c0_10, %c0_11], %12 {strides = array<i32>} : memref<32x8xf32, #tpu.memory_space<vmem>>, vector<32x8xf32>,
    return
  }
  func.func @transform_0(%arg0: i32) -> (i32, i32) {
    %c0_i32 = arith.constant 0 : i32
    %c0_i32_0 = arith.constant 0 : i32
    %c0_i32_1 = arith.constant 0 : i32
    return %c0_i32, %c0_i32_0 : i32, i32
  }
  func.func @transform_1(%arg0: i32) -> (i32, i32) {
    %c0_i32 = arith.constant 0 : i32
    %c0_i32_0 = arith.constant 0 : i32
    %c0_i32_1 = arith.constant 0 : i32
    return %c0_i32, %c0_i32_0 : i32, i32
  }
  func.func @transform_2(%arg0: i32) -> (i32, i32) {
    %c0_i32 = arith.constant 0 : i32
    %c0_i32_0 = arith.constant 0 : i32
    %c0_i32_1 = arith.constant 0 : i32
    return %c0_i32, %c0_i32_0 : i32, i32
  }
  func.func @transform_3(%arg0: i32) -> (i32, i32) {
    %c0_i32 = arith.constant 0 : i32
    %c0_i32_0 = arith.constant 0 : i32
    return %arg0, %c0_i32 : i32, i32
  }
  func.func @transform_4(%arg0: i32) -> (i32, i32) {
    %c0_i32 = arith.constant 0 : i32
    %c0_i32_0 = arith.constant 0 : i32
    return %arg0, %c0_i32 : i32, i32
  }
  func.func @transform_5(%arg0: i32) -> (i32, i32) {
    %c0_i32 = arith.constant 0 : i32
    %c0_i32_0 = arith.constant 0 : i32
    return %arg0, %c0_i32 : i32, i32
  }
}

</mosaic_0001>

<bundles_post_ra>
// kernel: tpu_custom_call.1
= control target key start
LH: loop header
LB: loop body
LE: loop exit
PB: predicated region body
PF: predicated region fallthrough
CT: control target
= control target key end

     0   :  { %s1215_s18 = smov 0   ;;  %s1849_s0 = inlined_call_operand.vmem [shape: bf16[32,8], index: 0, kind: input, shape index: {}]   ;;  %s1850_s1 = inlined_call_operand.vmem [shape: bf16[32,32], index: 1, kind: input, shape index: {}]   ;;  %s1851_s2 = inlined_call_operand.vmem [shape: f32[32,1], index: 2, kind: input, shape index: {}]   ;;  %s1852_s3 = inlined_call_operand.vmem [shape: bf16[64,32], index: 3, kind: input, shape index: {}]   ;;  %s1853_s4 = inlined_call_operand.vmem [shape: f32[64,1], index: 4, kind: input, shape index: {}]   ;;  %s1854_s5 = inlined_call_operand.vmem [shape: f32[64,8], index: 5, kind: output, shape index: {}]  }
   0x1 LB: > { %s1089_s19 = sadd.s32 4294967295, %s1176_s18   ;;  %p1093_p0 = scmp.ge.s32.totalorder %s1176_s18, 1  ;;  %s1176_s18 = sphi %s1215_s18, %s15_s18  }
   0x2   : > { %p199_p1 = scmp.lt.s32.totalorder %s1176_s18, 3 }
   0x4   : > { %p200_p2 = pnand %p1093_p0, %p199_p1 }
   0x6   : > { %203 = sbr.rel (%p200_p2) target bundleno = 474 (0x1da), region = 40 }
   0xb   : > { %v1145_v0 = vld [vmem:[%s1849_s0 + $0x8] sm:$0xff]  ;;  %s1094_s22 = sshll.u32 %s1089_s19, 2  ;;  %v1178_v1 = vmov 0   ;;  %v261_v2 = vld [vmem:[%s1851_s2 + $0x10] sm:$0xff]  ;;  %v259_v3 = vld [vmem:[%s1851_s2] sm:$0xff]  ;;  %vm305_vm0 = vcmask 261120  }
   0xc   : > { %1167 = vset.pattern.permute.xlu0 %v1178_v1  ;;  %1168 = vset.pattern.permute.xlu1 %v1178_v1  ;;  %v1144_v4 = vld [vmem:[%s1849_s0] sm:$0xff]  ;;  %p233_p3 = scmp.lt.s32.totalorder %s1094_s22, 7  ;;  %v1143_v6 = vld [vmem:[%s1850_s1 + $0x8] sm:$0xff]  ;;  %v262_v7 = vld [vmem:[%s1851_s2 + $0x18] sm:$0xff]  ;;  %v1179_v29 = vmov 920167782  }
   0xd   : > { %318 = vmatpush.bf16.msra.mxu0 %v1145_v0  ;;  %1148 = vmatpush.bf16.msra.mxu2 %v1145_v0  ;;  %v1142_v5 = vld [vmem:[%s1850_s1] sm:$0xff]  ;;  %v260_v8 = vld [vmem:[%s1851_s2 + $0x8] sm:$0xff]  ;;  %v1180_v32 = vmov 2475754826   ;;  %v1181_v34 = vmov 2131351028  }
   0xe   : > { %275 = vperm.xlu0 %1167, %v261_v2   ;;  %265 = vperm.xlu1 %1168, %v259_v3   ;;  %s1909_s22 = smov (!%p233_p3, %s1094_s22), 7  ;;  %v1182_v36 = vmov 2102212464   ;;  %v1183_v41 = vmov 1326507024  }
   0xf   : > { %1169 = vset.pattern.permute.xlu2 %v1178_v1  ;;  %s1097_s12 = sshll.u32 %s1909_s22, 3  ;;  %v1861_v60 = vmov 683565275   ;;  %s1095_s16 = sshll.u32 %s1909_s22, 2 }
  0x10   : > { %s1260_s15 = scalar_lea.vmem %s1853_s4, %s1097_s12  ;;  %s236_s20 = scalar_lea.vmem %s1852_s3, %s1095_s16 }
  0x11   : > { %319 = vmatpush.bf16.msra.mxu0 %v1144_v4  ;;  %1149 = vmatpush.bf16.msra.mxu2 %v1144_v4  ;;  %v959_v9 = vld [vmem:[%s1260_s15 + $0x10] sm:$0xff]  ;;  %v960_v10 = vld [vmem:[%s1260_s15 + $0x18] sm:$0xff]  ;;  %s248_s24 = scalar_lea.vmem %s1854_s5, %s1097_s12 }
  0x14   : > { %1116 = vmatmul.msk.bf16.vlgmr.msra.gmra.mxu0 %vm305_vm0, %v1142_v5  ;;  %1117 = vmatmul.msk.bf16.vlgmr.msra.gmra.mxu2 %vm305_vm0, %v1143_v6 }
  0x16   : > { %280 = vperm.xlu0 %1167, %v262_v7   ;;  %270 = vperm.xlu1 %1168, %v260_v8  }
  0x1e   : > { %973 = vperm.xlu0 %1167, %v959_v9   ;;  %978 = vperm.xlu1 %1168, %v960_v10  }
  0x80   : > { %v266_v11 = vpop.permute.xlu1 %265  ;;  %v276_v16 = vpop.permute.xlu0 %275 }
  0x88   : > { %v271_v46 = vpop.permute.xlu1 %270 }
  0x91   : > { %v321_v12 = vpop.f32.mrf.mxu0 }
  0x92   : > { %v1264_v13 = vadd.f32 %v321_v12, %v266_v11 }
  0x94   : > { %1872 = vst [vmem:[#allocation2_spill] sm:$0xff] %v1264_v13  ;;  %v334_v14 = vand.u32 2139095040, %v1264_v13  ;;  %v1856_v24 = vand.u32 2147483647, %v1264_v13 }
  0x96   : > { %v335_v15 = vshrl.u32 %v334_v14, 23  ;;  %v338_v31 = vand.u32 8388607, %v1856_v24 }
  0x97   : > { %v326_v17 = vpop.f32.mrf.mxu2 }
  0x98   : > { %v1118_v18 = vadd.s32 4294967169, %v335_v15  ;;  %v1267_v19 = vadd.f32 %v326_v17, %v276_v16  ;;  %v339_v47 = vor.u32 8388608, %v338_v31 }
  0x99   : > { %v323_v43 = vpop.f32.mrf.mxu0 }
  0x9a   : > { %1873 = vst [vmem:[#allocation3_spill] sm:$0xff] %v1267_v19  ;;  %v341_v20 = vadd.s32 1, %v1118_v18  ;;  %v644_v21 = vand.u32 2139095040, %v1267_v19  ;;  %v1290_v48 = vadd.f32 %v323_v43, %v271_v46  ;;  %v1857_v54 = vand.u32 2147483647, %v1267_v19 }
  0x9b   : > { %v1309_v59 = vshll.u32 %v339_v47, 8 }
  0x9c   : > { %vm342_vm1 = vcmp.gt.s32.totalorder %v341_v20, 0  ;;  %v645_v23 = vshrl.u32 %v644_v21, 23  ;;  %1874 = vst [vmem:[#allocation4_spill] sm:$0xff] %v1290_v48  ;;  %v489_v55 = vand.u32 2139095040, %v1290_v48  ;;  %v648_v62 = vand.u32 8388607, %v1857_v54 }
  0x9d   : > { %v343_v22 = vsel %vm342_vm1, %v341_v20, 0  ;;  %v1855_v0 = vand.u32 2147483647, %v1290_v48 }
  0x9e   : > { %v345_v25 = vand.u32 31, %v343_v22  ;;  %v1124_v27 = vadd.s32 4294967169, %v645_v23  ;;  %v1273_v28 = vshrl.u32 %v343_v22, 5  ;;  %v490_v5 = vshrl.u32 %v489_v55, 23 }
  0x9f   : > { %v649_v15 = vor.u32 8388608, %v648_v62 }
  0xa0   : > { %v1271_v26 = vsub.s32 32, %v345_v25  ;;  %v360_v30 = vshll.u32 %v1179_v29, %v345_v25  ;;  %v351_v33 = vshll.u32 %v1180_v32, %v345_v25  ;;  %v354_v35 = vshll.u32 %v1181_v34, %v345_v25 }
  0xa1   : > { %v357_v37 = vshll.u32 %v1182_v36, %v345_v25  ;;  %v651_v44 = vadd.s32 1, %v1124_v27  ;;  %vm366_vm2 = vcmp.lt.s32.totalorder %v1273_v28, 4  ;;  %vm363_vm4 = vcmp.lt.s32.totalorder %v1273_v28, 1 }
  0xa2   : > { %v352_v38 = vshrl.u32 %v1181_v34, %v1271_v26  ;;  %v355_v39 = vshrl.u32 %v1182_v36, %v1271_v26  ;;  %v358_v40 = vshrl.u32 %v1179_v29, %v1271_v26  ;;  %v361_v42 = vshrl.u32 %v1183_v41, %v1271_v26 }
  0xa3   : > { %vm652_vm3 = vcmp.gt.s32.totalorder %v651_v44, 0  ;;  %vm365_vm5 = vcmp.lt.s32.totalorder %v1273_v28, 3  ;;  %vm364_vm6 = vcmp.lt.s32.totalorder %v1273_v28, 2  ;;  %v348_v61 = vshll.u32 %v1861_v60, %v345_v25 }
  0xa4   : > { %v362_v45 = vor.u32 %v361_v42, %v360_v30  ;;  %v1292_v49 = vor.u32 %v352_v38, %v351_v33  ;;  %v1294_v50 = vor.u32 %v355_v39, %v354_v35  ;;  %v359_v51 = vor.u32 %v358_v40, %v357_v37 }
  0xa5   : > { %v653_v53 = vsel %vm652_vm3, %v651_v44, 0  ;;  %v349_v2 = vshrl.u32 %v1180_v32, %v1271_v26  ;;  %v1121_v33 = vadd.s32 4294967169, %v490_v5  ;;  %v1344_v35 = vand.u32 65535, %v1309_v59 }
  0xa6   : > { %v376_v52 = vsel %vm366_vm2, %v362_v45, 1326507024  ;;  %v375_v56 = vsel %vm363_vm4, %v1292_v49, %v1294_v50  ;;  %v655_v58 = vand.u32 31, %v653_v53  ;;  %v1321_v4 = vshrl.u32 %v653_v53, 5 }
  0xa7   : > { %v377_v57 = vsel %vm365_vm5, %v359_v51, %v376_v52  ;;  %v350_v20 = vor.u32 %v349_v2, %v348_v61  ;;  %v372_v21 = vsel %vm366_vm2, %v359_v51, 920167782  ;;  %v493_v39 = vand.u32 8388607, %v1855_v0  ;;  %v328_v51 = vpop.f32.mrf.mxu2 }
  0xa8   : > { %v656_v63 = vsub.s32 32, %v655_v58  ;;  %v1319_v3 = vsel %vm364_vm6, %v375_v56, %v377_v57  ;;  %v661_v6 = vshll.u32 %v1180_v32, %v655_v58  ;;  %v664_v8 = vshll.u32 %v1181_v34, %v655_v58 }
  0xa9   : > { %v667_v10 = vshll.u32 %v1182_v36, %v655_v58  ;;  %v670_v12 = vshll.u32 %v1179_v29, %v655_v58  ;;  %v383_v25 = vshrl.u32 %v1319_v3, 16  ;;  %v658_v27 = vshll.u32 %v1861_v60, %v655_v58 }
  0xaa   : > { %v662_v7 = vshrl.u32 %v1181_v34, %v656_v63  ;;  %v665_v9 = vshrl.u32 %v1182_v36, %v656_v63  ;;  %v668_v11 = vshrl.u32 %v1179_v29, %v656_v63  ;;  %v671_v14 = vshrl.u32 %v1183_v41, %v656_v63 }
  0xab   : > { %v659_v16 = vshrl.u32 %v1180_v32, %v656_v63  ;;  %vm673_vm7 = vcmp.lt.s32.totalorder %v1321_v4, 1  ;;  %vm676_vm8 = vcmp.lt.s32.totalorder %v1321_v4, 4  ;;  %vm675_vm9 = vcmp.lt.s32.totalorder %v1321_v4, 3 }
  0xac   : > { %v663_v17 = vor.u32 %v662_v7, %v661_v6  ;;  %v666_v18 = vor.u32 %v665_v9, %v664_v8  ;;  %v669_v22 = vor.u32 %v668_v11, %v667_v10  ;;  %v672_v23 = vor.u32 %v671_v14, %v670_v12 }
  0xad   : > { %v660_v37 = vor.u32 %v659_v16, %v658_v27  ;;  %v371_v40 = vsel %vm363_vm4, %v350_v20, %v1292_v49  ;;  %v373_v42 = vsel %vm365_vm5, %v1294_v50, %v372_v21  ;;  %vm674_vm10 = vcmp.lt.s32.totalorder %v1321_v4, 2 }
  0xae   : > { %v685_v30 = vsel %vm673_vm7, %v663_v17, %v666_v18  ;;  %v686_v31 = vsel %vm676_vm8, %v672_v23, 1326507024  ;;  %v496_v43 = vadd.s32 1, %v1121_v33  ;;  %v347_v44 = vshrl.u32 %v1861_v60, %v1271_v26  ;;  %v281_v26 = vpop.permute.xlu0 %280 }
  0xaf   : > { %v687_v38 = vsel %vm675_vm9, %v669_v22, %v686_v31  ;;  %v657_v45 = vshrl.u32 %v1861_v60, %v656_v63  ;;  %v678_v46 = vsel %vm676_vm8, %v666_v18, 2102212464  ;;  %v1367_v52 = vmul.u32 %v383_v25, %v1344_v35 }
  0xb0   : > { %v1364_v47 = vsel %vm674_vm10, %v685_v30, %v687_v38  ;;  %v682_v53 = vsel %vm676_vm8, %v669_v22, 920167782  ;;  %v1371_v55 = vshll.u32 %v649_v15, 8  ;;  %vm497_vm11 = vcmp.gt.s32.totalorder %v496_v43, 0 }
  0xb1   : > { %v368_v56 = vsel %vm366_vm2, %v1294_v50, 2102212464  ;;  %v1378_v57 = vsel %vm364_vm6, %v371_v40, %v373_v42  ;;  %v1859_v58 = vand.u32 65535, %v1319_v3  ;;  %v677_v61 = vsel %vm673_vm7, %v657_v45, %v660_v37 }
  0xb2   : > { %v679_v62 = vsel %vm675_vm9, %v663_v17, %v678_v46  ;;  %v693_v63 = vshrl.u32 %v1364_v47, 16  ;;  %v498_v2 = vsel %vm497_vm11, %v496_v43, 0  ;;  %v1386_v5 = vadd.f32 %v328_v51, %v281_v26 }
  0xb3   : > { %v367_v50 = vsel %vm363_vm4, %v347_v44, %v350_v20  ;;  %v681_v6 = vsel %vm673_vm7, %v660_v37, %v663_v17  ;;  %v683_v7 = vsel %vm675_vm9, %v666_v18, %v682_v53  ;;  %v500_v8 = vand.u32 31, %v498_v2 }
  0xb4   : > { %1875 = vst [vmem:[#allocation5_spill] sm:$0xff] %v1386_v5  ;;  %v369_v9 = vsel %vm365_vm5, %v1292_v49, %v368_v56  ;;  %v1860_v10 = vshll.u32 %v1367_v52, 16  ;;  %v405_v11 = vshrl.u32 %v1378_v57, 16  ;;  %v1400_v12 = vand.u32 65535, %v1371_v55 }
  0xb5   : > { %v1403_v14 = vshrl.u32 %v1309_v59, 16  ;;  %v1408_v15 = vmul.u32 %v1859_v58, %v1344_v35  ;;  %v1412_v16 = vsel %vm674_vm10, %v677_v61, %v679_v62  ;;  %v1416_v49 = vsel %vm674_vm10, %v681_v6, %v683_v7 }
  0xb6   : > { %v1419_v17 = vmul.u32 %v693_v63, %v1400_v12  ;;  %v494_v18 = vor.u32 8388608, %v493_v39  ;;  %v799_v20 = vand.u32 2139095040, %v1386_v5  ;;  %v1424_v21 = vsel %vm364_vm6, %v367_v50, %v369_v9 }
  0xb7   : > { %v1427_v22 = vmul.u32 %v383_v25, %v1403_v14  ;;  %v1430_v27 = vsub.s32 32, %v500_v8  ;;  %v1435_v4 = vadd.s32 %v1860_v10, %v1408_v15  ;;  %v1438_v30 = vmul.u32 %v405_v11, %v1344_v35 }
  0xb8   : > { %v1441_v31 = vmul.u32 %v405_v11, %v1403_v14  ;;  %v1444_v28 = vshrl.u32 %v1371_v55, 16  ;;  %v692_v25 = vand.u32 65535, %v1364_v47  ;;  %v715_v37 = vshrl.u32 %v1416_v49, 16 }
  0xb9   : > { %v698_v39 = vshll.u32 %v1419_v17, 16  ;;  %v503_v40 = vshll.u32 %v1861_v60, %v500_v8  ;;  %v1453_v42 = vshll.u32 %v494_v18, 8  ;;  %v800_v43 = vshrl.u32 %v799_v20, 23 }
  0xba   : > { %v504_v44 = vshrl.u32 %v1180_v32, %v1430_v27  ;;  %v506_v45 = vshll.u32 %v1180_v32, %v500_v8  ;;  %v509_v46 = vshll.u32 %v1181_v34, %v500_v8  ;;  %v512_v47 = vshll.u32 %v1182_v36, %v500_v8 }
  0xbb   : > { %1876 = vst [vmem:[#allocation6_spill] sm:$0xff] %v1453_v42  ;;  %v507_v51 = vshrl.u32 %v1181_v34, %v1430_v27  ;;  %v510_v53 = vshrl.u32 %v1182_v36, %v1430_v27  ;;  %v513_v26 = vshrl.u32 %v1179_v29, %v1430_v27  ;;  %v1127_v56 = vadd.s32 4294967169, %v800_v43 }
  0xbc   : > { %v694_v61 = vmul.u32 %v692_v25, %v1400_v12  ;;  %v515_v62 = vshll.u32 %v1179_v29, %v500_v8  ;;  %v516_v50 = vshrl.u32 %v1183_v41, %v1430_v27  ;;  %v1858_v6 = vand.u32 2147483647, %v1386_v5 }
  0xbd   : > { %v697_v7 = vmul.u32 %v693_v63, %v1444_v28  ;;  %v1473_v9 = vmul.u32 %v715_v37, %v1400_v12  ;;  %v1475_v11 = vshrl.u32 %v498_v2, 5  ;;  %v806_v18 = vadd.s32 1, %v1127_v56 }
  0xbe   : > { %vm1477_vm12 = vc.u32 %v694_v61, %v698_v39  ;;  %v1482_v43 = vmul.u32 %v715_v37, %v1444_v28  ;;  %v1484_v8 = vor.u32 %v504_v44, %v503_v40  ;;  %v1487_v0 = vmul.u32 %v692_v25, %v1444_v28 }
  0xbf   : > { %v1489_v24 = vor.u32 %v507_v51, %v506_v45  ;;  %v1491_v63 = vor.u32 %v510_v53, %v509_v46  ;;  %v514_v54 = vor.u32 %v513_v26, %v512_v47  ;;  %vm807_vm13 = vcmp.gt.s32.totalorder %v806_v18, 0 }
  0xc0   : > { %v517_v2 = vor.u32 %v516_v50, %v515_v62  ;;  %v1494_v56 = vand.u32 65535, %v1453_v42  ;;  %v1497_v23 = vshrl.u32 %v1453_v42, 16  ;;  %v803_v37 = vand.u32 8388607, %v1858_v6 }
  0xc1   : > { %v704_v40 = vadd.s32 %v698_v39, %v694_v61  ;;  %vm518_vm14 = vcmp.lt.s32.totalorder %v1475_v11, 1  ;;  %v808_v25 = vsel %vm807_vm13, %v806_v18, 0  ;;  %v699_v44 = vshrl.u32 %v1419_v17, 16 }
  0xc2   : > { %vm520_vm15 = vcmp.lt.s32.totalorder %v1475_v11, 3  ;;  %vm521_vm1 = vcmp.lt.s32.totalorder %v1475_v11, 4  ;;  %v810_v45 = vand.u32 31, %v808_v25  ;;  %v703_v46 = vsel %vm1477_vm12, 1, %v1178_v1 }
  0xc3   : > { %v1512_v47 = vsel %vm518_vm14, %v1484_v8, %v1489_v24  ;;  %v527_v39 = vsel %vm521_vm1, %v514_v54, 920167782  ;;  %v530_v17 = vsel %vm518_vm14, %v1489_v24, %v1491_v63  ;;  %v700_v51 = vshll.u32 %v1487_v0, 16 }
  0xc4   : > { %vm519_vm2 = vcmp.lt.s32.totalorder %v1475_v11, 2  ;;  %v531_v53 = vsel %vm521_vm1, %v517_v2, 1326507024  ;;  %v804_v26 = vor.u32 8388608, %v803_v37  ;;  %v1524_v61 = vshrl.u32 %v808_v25, 5 }
  0xc5   : > { %v811_v62 = vsub.s32 32, %v810_v45  ;;  %v813_v50 = vshll.u32 %v1861_v60, %v810_v45  ;;  %v816_v18 = vshll.u32 %v1180_v32, %v810_v45  ;;  %v705_v20 = vadd.s32 %v703_v46, %v697_v7 }
  0xc6   : > { %vm1528_vm3 = vc.u32 %v704_v40, %v700_v51  ;;  %v819_v10 = vshll.u32 %v1181_v34, %v810_v45  ;;  %v822_v37 = vshll.u32 %v1182_v36, %v810_v45  ;;  %v825_v60 = vshll.u32 %v1179_v29, %v810_v45 }
  0xc7   : > { %v814_v38 = vshrl.u32 %v1180_v32, %v811_v62  ;;  %v817_v58 = vshrl.u32 %v1181_v34, %v811_v62  ;;  %v820_v2 = vshrl.u32 %v1182_v36, %v811_v62  ;;  %v823_v25 = vshrl.u32 %v1179_v29, %v811_v62 }
  0xc8   : > { %v826_v7 = vshrl.u32 %v1183_v41, %v811_v62  ;;  %v532_v40 = vsel %vm520_vm15, %v514_v54, %v531_v53  ;;  %vm828_vm4 = vcmp.lt.s32.totalorder %v1524_v61, 1  ;;  %v707_v36 = vsel %vm1528_vm3, 1, %v1178_v1 }
  0xc9   : > { %v1542_v46 = vor.u32 %v814_v38, %v813_v50  ;;  %v1544_v32 = vor.u32 %v817_v58, %v816_v18  ;;  %v821_v51 = vor.u32 %v820_v2, %v819_v10  ;;  %v824_v33 = vor.u32 %v823_v25, %v822_v37 }
  0xca   : > { %v827_v34 = vor.u32 %v826_v7, %v825_v60  ;;  %vm831_vm5 = vcmp.lt.s32.totalorder %v1524_v61, 4  ;;  %v1558_v54 = vshll.u32 %v804_v26, 8  ;;  %vm830_vm6 = vcmp.lt.s32.totalorder %v1524_v61, 3 }
  0xcb   : > { %v836_v29 = vsel %vm828_vm4, %v1542_v46, %v1544_v32  ;;  %v840_v41 = vsel %vm828_vm4, %v1544_v32, %v821_v51  ;;  %v837_v60 = vsel %vm831_vm5, %v824_v33, 920167782  ;;  %v709_v10 = vadd.s32 %v707_v36, %v705_v20 }
  0xcc   : > { %v841_v58 = vsel %vm831_vm5, %v827_v34, 1326507024  ;;  %v1568_v38 = vsel %vm520_vm15, %v1491_v63, %v527_v39  ;;  %vm829_vm7 = vcmp.lt.s32.totalorder %v1524_v61, 2  ;;  %v838_v6 = vsel %vm830_vm6, %v821_v51, %v837_v60 }
  0xcd   : > { %v842_v45 = vsel %vm830_vm6, %v824_v33, %v841_v58  ;;  %v1577_v53 = vsel %vm519_vm2, %v530_v17, %v532_v40  ;;  %v839_v26 = vsel %vm829_vm7, %v836_v29, %v838_v6  ;;  %v1881_v39 = vand.u32 65535, %v1416_v49 }
  0xce   : > { %v843_v50 = vsel %vm829_vm7, %v840_v41, %v842_v45  ;;  %v845_v20 = vand.u32 65535, %v1558_v54  ;;  %v710_v25 = vadd.s32 %v709_v10, %v699_v44  ;;  %v870_v33 = vshrl.u32 %v839_v26, 16 }
  0xcf   : > { %v718_v18 = vmul.u32 %v1881_v39, %v1444_v28  ;;  %v847_v2 = vand.u32 65535, %v843_v50  ;;  %v848_v37 = vshrl.u32 %v843_v50, 16  ;;  %v701_v7 = vshrl.u32 %v1487_v0, 16 }
  0xd0   : > { %v1882_v17 = vmov %v1881_v39  ;;  %v720_v34 = vshll.u32 %v1473_v9, 16  ;;  %v1883_v36 = vmov 683565275   ;;  %v833_v41 = vsel %vm831_vm5, %v821_v51, 2102212464 }
  0xd1   : > { %v716_v40 = vmul.u32 %v1882_v17, %v1400_v12  ;;  %v812_v29 = vshrl.u32 %v1883_v36, %v811_v62  ;;  %v846_v28 = vshrl.u32 %v1558_v54, 16  ;;  %v850_v60 = vmul.u32 %v848_v37, %v845_v20 }
  0xd2   : > { %v869_v58 = vand.u32 65535, %v839_v26  ;;  %v722_v6 = vshll.u32 %v718_v18, 16  ;;  %v849_v10 = vmul.u32 %v847_v2, %v845_v20  ;;  %v1596_v45 = vadd.s32 %v710_v25, %v701_v7 }
  0xd3   : > { %vm724_vm8 = vc.u32 %v716_v40, %v720_v34  ;;  %v726_v44 = vadd.s32 %v720_v34, %v716_v40  ;;  %v853_v0 = vshll.u32 %v850_v60, 16  ;;  %v1884_v49 = vshll.u32 %v1367_v52, 16 }
  0xd4   : > { %v725_v12 = vsel %vm724_vm8, 1, %v1178_v1  ;;  %v872_v51 = vmul.u32 %v870_v33, %v845_v20  ;;  %v851_v26 = vmul.u32 %v847_v2, %v846_v28  ;;  %v721_v17 = vshrl.u32 %v1473_v9, 16 }
  0xd5   : > { %vm1602_vm9 = vc.u32 %v1408_v15, %v1884_v49  ;;  %v727_v50 = vadd.s32 %v725_v12, %v1482_v43  ;;  %vm728_vm10 = vc.u32 %v726_v44, %v722_v6  ;;  %vm857_vm11 = vc.u32 %v849_v10, %v853_v0 }
  0xd6   : > { %v859_v39 = vadd.s32 %v853_v0, %v849_v10  ;;  %v729_v25 = vsel %vm728_vm10, 1, %v1178_v1  ;;  %v852_v7 = vmul.u32 %v848_v37, %v846_v28  ;;  %v874_v40 = vmul.u32 %v870_v33, %v846_v28 }
  0xd7   : > { %v731_v34 = vadd.s32 %v729_v25, %v727_v50  ;;  %v855_v48 = vshll.u32 %v851_v26, 16  ;;  %v723_v13 = vshrl.u32 %v718_v18, 16  ;;  %v858_v15 = vsel %vm857_vm11, 1, %v1178_v1 }
  0xd8   : > { %v871_v49 = vmul.u32 %v869_v58, %v845_v20  ;;  %v873_v42 = vmul.u32 %v869_v58, %v846_v28  ;;  %v860_v19 = vadd.s32 %v858_v15, %v852_v7  ;;  %v875_v43 = vshll.u32 %v872_v51, 16 }
  0xd9   : > { %v732_v5 = vadd.s32 %v731_v34, %v721_v17  ;;  %vm861_vm12 = vc.u32 %v859_v39, %v855_v48  ;;  %v1610_v2 = vadd.s32 %v726_v44, %v722_v6  ;;  %v854_v10 = vshrl.u32 %v850_v60, 16 }
  0xda   : > { %v862_v9 = vsel %vm861_vm12, 1, %v1178_v1  ;;  %v877_v0 = vshll.u32 %v873_v42, 16  ;;  %vm879_vm13 = vc.u32 %v871_v49, %v875_v43  ;;  %v881_v33 = vadd.s32 %v875_v43, %v871_v49 }
  0xdb   : > { %v733_v12 = vadd.s32 %v732_v5, %v723_v13  ;;  %v864_v37 = vadd.s32 %v862_v9, %v860_v19  ;;  %v832_v18 = vsel %vm828_vm4, %v812_v29, %v1542_v46  ;;  %vm736_vm3 = vc.u32 %v1596_v45, %v1610_v2 }
  0xdc   : > { %v880_v48 = vsel %vm879_vm13, 1, %v1178_v1  ;;  %v1887_v20 = vand.u32 65535, %v1319_v3  ;;  %vm883_vm5 = vc.u32 %v881_v33, %v877_v0  ;;  %v834_v13 = vsel %vm830_vm6, %v1544_v32, %v833_v41 }
  0xdd   : > { %v737_v60 = vadd.s32 1, %v733_v12  ;;  %v865_v58 = vadd.s32 %v864_v37, %v854_v10  ;;  %v882_v6 = vadd.s32 %v880_v48, %v874_v40  ;;  %v856_v19 = vshrl.u32 %v851_v26, 16 }
  0xde   : > { %v386_v28 = vmul.u32 %v1887_v20, %v1403_v14  ;;  %v884_v5 = vsel %vm883_vm5, 1, %v1178_v1  ;;  %v876_v44 = vshrl.u32 %v872_v51, 16  ;;  %v878_v50 = vshrl.u32 %v873_v42, 16 }
  0xdf   : > { %v738_v29 = vsel %vm736_vm3, %v737_v60, %v733_v12  ;;  %v886_v39 = vadd.s32 %v884_v5, %v882_v6  ;;  %v1888_v3 = vmul.u32 %v1371_v55, %v1412_v16  ;;  %v1629_v25 = vadd.s32 %v865_v58, %v856_v19 }
  0xe0   : > { %v390_v46 = vshll.u32 %v386_v28, 16  ;;  %v393_v7 = vsel %vm1602_vm9, 1, %v1178_v1  ;;  %v1635_v32 = vadd.s32 %v881_v33, %v877_v0  ;;  %v1889_v42 = vand.u32 65535, %v1378_v57 }
  0xe1   : > { %v739_v17 = vadd.s32 %v738_v29, %v1888_v3  ;;  %v887_v41 = vadd.s32 %v886_v39, %v876_v44  ;;  %v395_v26 = vadd.s32 %v393_v7, %v1427_v22  ;;  %v410_v62 = vshll.u32 %v1438_v30, 16 }
  0xe2   : > { %vm396_vm4 = vc.u32 %v1435_v4, %v390_v46  ;;  %v406_v51 = vmul.u32 %v1889_v42, %v1344_v35  ;;  %v1890_v16 = vmov %v1889_v42  ;;  %v538_v4 = vshrl.u32 %v1577_v53, 16 }
  0xe3   : > { %v740_v40 = vadd.s32 536870912, %v739_v17  ;;  %v397_v55 = vsel %vm396_vm4, 1, %v1178_v1  ;;  %v408_v34 = vmul.u32 %v1890_v16, %v1403_v14  ;;  %v835_v15 = vsel %vm829_vm7, %v832_v18, %v834_v13 }
  0xe4   : > { %v888_v49 = vadd.s32 %v887_v41, %v878_v50  ;;  %v399_v22 = vadd.s32 %v397_v55, %v395_v26  ;;  %vm891_vm6 = vc.u32 %v1629_v25, %v1635_v32  ;;  %v389_v35 = vshrl.u32 %v1367_v52, 16 }
  0xe5   : > { %v1649_v43 = vshrl.u32 %v740_v40, 30  ;;  %vm414_vm8 = vc.u32 %v406_v51, %v410_v62  ;;  %v412_v57 = vshll.u32 %v408_v34, 16  ;;  %v416_v9 = vadd.s32 %v410_v62, %v406_v51 }
  0xe6   : > { %v892_v10 = vadd.s32 1, %v888_v49  ;;  %v415_v14 = vsel %vm414_vm8, 1, %v1178_v1  ;;  %v889_v0 = vmul.u32 %v1558_v54, %v835_v15  ;;  %v400_v12 = vadd.s32 %v399_v22, %v389_v35 }
  0xe7   : > { %v742_v61 = vshll.u32 %v1649_v43, 30  ;;  %v417_v37 = vadd.s32 %v415_v14, %v1441_v31  ;;  %v502_v33 = vshrl.u32 %v1883_v36, %v1430_v27  ;;  %v1663_v52 = vmul.u32 %v538_v4, %v1494_v56 }
  0xe8   : > { %v893_v18 = vsel %vm891_vm6, %v892_v10, %v888_v49  ;;  %vm418_vm7 = vc.u32 %v416_v9, %v412_v57  ;;  %v391_v60 = vshrl.u32 %v386_v28, 16  ;;  %v1670_v31 = vsel %vm519_vm2, %v1512_v47, %v1568_v38 }
  0xe9   : > { %v743_v48 = vsub.s32 %v739_v17, %v742_v61  ;;  %v894_v20 = vadd.s32 %v893_v18, %v889_v0  ;;  %v419_v54 = vsel %vm418_vm7, 1, %v1178_v1  ;;  %v537_v27 = vand.u32 65535, %v1577_v53 }
  0xea   : > { %v411_v36 = vshrl.u32 %v1438_v30, 16  ;;  %v421_v58 = vadd.s32 %v419_v54, %v417_v37  ;;  %v1674_v19 = vadd.s32 %v400_v12, %v391_v60  ;;  %v523_v28 = vsel %vm521_vm1, %v1491_v63, 2102212464 }
  0xeb   : > { %vm744_vm9 = vcmp.lt.s32.totalorder %v743_v48, 0  ;;  %v745_v6 = vsub.s32 0, %v743_v48  ;;  %v895_v13 = vadd.s32 536870912, %v894_v20  ;;  %v543_v5 = vshll.u32 %v1663_v52, 16 }
  0xec   : > { %v413_v46 = vshrl.u32 %v408_v34, 16  ;;  %v422_v29 = vadd.s32 %v421_v58, %v411_v36  ;;  %v560_v47 = vshrl.u32 %v1670_v31, 16  ;;  %v1683_v30 = vadd.s32 %v416_v9, %v412_v57 }
  0xed   : > { %v746_v38 = vsel %vm744_vm9, %v745_v6, %v743_v48  ;;  %v1681_v44 = vshrl.u32 %v895_v13, 30  ;;  %v539_v50 = vmul.u32 %v537_v27, %v1494_v56  ;;  %v1687_v17 = vmul.u32 %v537_v27, %v1497_v23 }
  0xee   : > { %v747_v39 = vclz %v746_v38  ;;  %v423_v3 = vadd.s32 %v422_v29, %v413_v46  ;;  %v424_v63 = vmul.u32 %v1309_v59, %v1424_v21  ;;  %vm426_vm1 = vc.u32 %v1674_v19, %v1683_v30 }
  0xef   : > { %v897_v7 = vshll.u32 %v1681_v44, 30  ;;  %v522_v41 = vsel %vm518_vm14, %v502_v33, %v1484_v8  ;;  %v549_v26 = vadd.s32 %v543_v5, %v539_v50  ;;  %v524_v40 = vsel %vm520_vm15, %v1489_v24, %v523_v28 }
  0xf0   : > { %v1125_v42 = vadd.s32 4294967294, %v747_v39  ;;  %v427_v51 = vadd.s32 1, %v423_v3  ;;  %vm547_vm10 = vc.u32 %v539_v50, %v543_v5  ;;  %v559_v55 = vand.u32 65535, %v1670_v31 }
  0xf1   : > { %v898_v59 = vsub.s32 %v894_v20, %v897_v7  ;;  %v1702_v21 = vmul.u32 %v560_v47, %v1494_v56  ;;  %v545_v34 = vshll.u32 %v1687_v17, 16  ;;  %v735_v8 = vadd.s32 %v1610_v2, %v1596_v45 }
  0xf2   : > { %vm1126_vm11 = vcmp.lt.s32.totalorder %v1125_v42, 0  ;;  %v428_v16 = vsel %vm426_vm1, %v427_v51, %v423_v3  ;;  %v548_v24 = vsel %vm547_vm10, 1, %v1178_v1  ;;  %v542_v35 = vmul.u32 %v538_v4, %v1497_v23 }
  0xf3   : > { %v750_v62 = vsel %vm1126_vm11, 0, %v1125_v42  ;;  %vm899_vm14 = vcmp.lt.s32.totalorder %v898_v59, 0  ;;  %v900_v15 = vsub.s32 0, %v898_v59  ;;  %vm551_vm15 = vc.u32 %v549_v26, %v545_v34 }
  0xf4   : > { %v751_v49 = vsub.s32 32, %v750_v62  ;;  %v755_v22 = vsub.s32 4294967266, %v750_v62  ;;  %v752_v10 = vshll.u32 %v743_v48, %v750_v62  ;;  %v429_v14 = vadd.s32 %v428_v16, %v424_v63  ;;  %v1891_v48 = vld [vmem:[#allocation3_spill] sm:$0xff] }
  0xf5   : > { %v901_v57 = vsel %vm899_vm14, %v900_v15, %v898_v59  ;;  %v565_v45 = vshll.u32 %v1702_v21, 16  ;;  %v1714_v2 = vsel %vm519_vm2, %v522_v41, %v524_v40  ;;  %v550_v37 = vadd.s32 %v548_v24, %v542_v35 }
  0xf6   : > { %v753_v9 = vshrl.u32 %v735_v8, %v751_v49  ;;  %v756_v0 = vadd.s32 127, %v755_v22  ;;  %v902_v61 = vclz %v901_v57  ;;  %v430_v12 = vadd.s32 536870912, %v429_v14  ;;  %v1896_v22 = vld [vmem:[#allocation6_spill] sm:$0xff] }
  0xf7   : > { %v552_v33 = vsel %vm551_vm15, 1, %v1178_v1  ;;  %v561_v4 = vmul.u32 %v559_v55, %v1494_v56  ;;  %vm643_vm12 = vcmp.lt.s32.totalorder %v1891_v48, 0  ;;  %v564_v60 = vmul.u32 %v560_v47, %v1497_v23 }
  0xf8   : > { %v754_v18 = vor.u32 %v753_v9, %v752_v10  ;;  %v757_v20 = vshll.u32 %v756_v0, 23  ;;  %v1128_v53 = vadd.s32 4294967294, %v902_v61  ;;  %v890_v54 = vadd.s32 %v1635_v32, %v1629_v25 }
  0xf9   : > { %v1722_v31 = vshrl.u32 %v430_v12, 30  ;;  %v563_v11 = vmul.u32 %v559_v55, %v1497_v23  ;;  %v1892_v27 = vand.u32 2147483647, %v1891_v48  ;;  %v544_v56 = vshrl.u32 %v1663_v52, 16  ;;  %v1895_v55 = vld [vmem:[#allocation5_spill] sm:$0xff] }
  0xfa   : > { %v758_v58 = vor.u32 4788187, %v757_v20  ;;  %vm1129_vm13 = vcmp.lt.s32.totalorder %v1128_v53, 0  ;;  %vm569_vm3 = vc.u32 %v561_v4, %v565_v45  ;;  %v554_v28 = vadd.s32 %v552_v33, %v550_v37 }
  0xfb   : > { %vm1727_vm2 = vcmp.le.f32.partialorder %v1892_v27, 0.7853982  ;;  %v905_v6 = vsel %vm1129_vm13, 0, %v1128_v53  ;;  %v432_v13 = vshll.u32 %v1722_v31, 30  ;;  %v570_v25 = vsel %vm569_vm3, 1, %v1178_v1 }
  0xfc   : > { %v759_v32 = vand.u32 2147483647, %v758_v58  ;;  %v761_v5 = vcvt.s32.f32 %v754_v18  ;;  %v906_v23 = vsub.s32 32, %v905_v6  ;;  %v910_v46 = vsub.s32 4294967266, %v905_v6 }
  0xfd   : > { %v1734_v29 = vsub.s32 %v429_v14, %v432_v13  ;;  %v567_v47 = vshll.u32 %v563_v11, 16  ;;  %v571_v38 = vadd.s32 %v565_v45, %v561_v4  ;;  %v572_v50 = vadd.s32 %v570_v25, %v564_v60 }
  0xfe   : > { %v762_v39 = vmul.f32 %v761_v5, %v759_v32  ;;  %v907_v3 = vshll.u32 %v898_v59, %v905_v6  ;;  %v908_v63 = vshrl.u32 %v890_v54, %v906_v23  ;;  %v911_v52 = vadd.s32 127, %v910_v46 }
  0xff   : > { %vm434_vm5 = vcmp.lt.s32.totalorder %v1734_v29, 0  ;;  %v435_v7 = vsub.s32 0, %v1734_v29  ;;  %v555_v41 = vadd.s32 %v554_v28, %v544_v56  ;;  %vm573_vm4 = vc.u32 %v571_v38, %v567_v47 }
 0x100   : > { %v763_v26 = vxor.u32 2147483648, %v762_v39  ;;  %v909_v42 = vor.u32 %v908_v63, %v907_v3  ;;  %v912_v51 = vshll.u32 %v911_v52, 23  ;;  %v574_v40 = vsel %vm573_vm4, 1, %v1178_v1 }
 0x101   : > { %vm798_vm6 = vcmp.lt.s32.totalorder %v1895_v55, 0  ;;  %v436_v16 = vsel %vm434_vm5, %v435_v7, %v1734_v29  ;;  %v546_v34 = vshrl.u32 %v1687_v17, 16  ;;  %v576_v59 = vadd.s32 %v574_v40, %v572_v50 }
 0x102   : > { %v764_v8 = vsel %vm643_vm12, %v763_v26, %v762_v39  ;;  %v913_v62 = vor.u32 4788187, %v912_v51  ;;  %v437_v15 = vclz %v436_v16  ;;  %v566_v49 = vshrl.u32 %v1702_v21, 16 }
 0x103   : > { %v579_v24 = vmul.u32 %v1896_v22, %v1714_v2  ;;  %v767_v1 = vsel %vm1727_vm2, %v1891_v48, %v764_v8  ;;  %v916_v35 = vcvt.s32.f32 %v909_v42  ;;  %v1750_v10 = vadd.s32 %v555_v41, %v546_v34 }
 0x104   : > { %v769_v57 = vmul.f32 %v767_v1, %v767_v1  ;;  %v914_v17 = vand.u32 2147483647, %v913_v62  ;;  %v1119_v14 = vadd.s32 4294967294, %v437_v15  ;;  %v577_v9 = vadd.s32 %v576_v59, %v566_v49 }
 0x105   : > { %v765_v0 = vsub.s32 4, %v1649_v43  ;;  %v1897_v61 = vand.u32 2147483647, %v1895_v55  ;;  %v568_v45 = vshrl.u32 %v563_v11, 16  ;;  %v1759_v2 = vadd.s32 %v571_v38, %v567_v47 }
 0x106   : > { %v770_v12 = vmul.f32 -0.001358992, %v769_v57  ;;  %v777_v37 = vmul.f32 -0.00019511016, %v769_v57  ;;  %v917_v33 = vmul.f32 %v916_v35, %v914_v17  ;;  %vm1120_vm7 = vcmp.lt.s32.totalorder %v1119_v14, 0 }
 0x107   : > { %vm1755_vm8 = vcmp.le.f32.partialorder %v1897_v61, 0.7853982  ;;  %v425_v18 = vadd.s32 %v1683_v30, %v1674_v19  ;;  %v440_v20 = vsel %vm1120_vm7, 0, %v1119_v14  ;;  %v578_v53 = vadd.s32 %v577_v9, %v568_v45 }
 0x108   : > { %vm581_vm9 = vc.u32 %v1750_v10, %v1759_v2  ;;  %v771_v4 = vadd.f32 0.041655596, %v770_v12  ;;  %v778_v60 = vadd.f32 0.008332121, %v777_v37  ;;  %v918_v54 = vxor.u32 2147483648, %v917_v33  ;;  %v1900_v12 = vld [vmem:[#allocation2_spill] sm:$0xff] }
 0x109   : > { %v441_v27 = vsub.s32 32, %v440_v20  ;;  %v766_v11 = vsel %vm643_vm12, %v765_v0, %v1649_v43  ;;  %v920_v58 = vsub.s32 4, %v1681_v44  ;;  %v445_v56 = vsub.s32 4294967266, %v440_v20 }
 0x10a   : > { %v582_v6 = vadd.s32 1, %v578_v53  ;;  %v772_v13 = vmul.f32 %v771_v4, %v769_v57  ;;  %v779_v28 = vmul.f32 %v778_v60, %v769_v57  ;;  %v919_v19 = vsel %vm798_vm6, %v918_v54, %v917_v33 }
 0x10b   : > { %v443_v30 = vshrl.u32 %v425_v18, %v441_v27  ;;  %v922_v25 = vsel %vm1755_vm8, %v1895_v55, %v919_v19  ;;  %v442_v32 = vshll.u32 %v1734_v29, %v440_v20  ;;  %v446_v5 = vadd.s32 127, %v445_v56 }
 0x10c   : > { %v583_v43 = vsel %vm581_vm9, %v582_v6, %v578_v53  ;;  %v768_v23 = vsel %vm1727_vm2, 0, %v766_v11  ;;  %v773_v46 = vadd.f32 -0.4999988, %v772_v13  ;;  %v780_v47 = vadd.f32 -0.16666654, %v779_v28 }
 0x10d   : > { %v924_v38 = vmul.f32 %v922_v25, %v922_v25  ;;  %v444_v50 = vor.u32 %v443_v30, %v442_v32  ;;  %v447_v39 = vshll.u32 %v446_v5, 23  ;;  %v584_v3 = vadd.s32 %v583_v43, %v579_v24 }
 0x10e   : > { %v781_v63 = vmul.f32 %v780_v47, %v769_v57  ;;  %v785_v41 = vadd.s32 3, %v768_v23  ;;  %v921_v29 = vsel %vm798_vm6, %v920_v58, %v1681_v44  ;;  %v774_v51 = vmul.f32 %v773_v46, %v769_v57 }
 0x10f   : > { %v925_v52 = vmul.f32 -0.001358992, %v924_v38  ;;  %v932_v7 = vmul.f32 -0.00019511016, %v924_v38  ;;  %v448_v26 = vor.u32 4788187, %v447_v39  ;;  %v451_v59 = vcvt.s32.f32 %v444_v50 }
 0x110   : > { %v585_v42 = vadd.s32 536870912, %v584_v3  ;;  %v782_v40 = vadd.f32 1.0, %v781_v63  ;;  %v923_v15 = vsel %vm1755_vm8, 0, %v921_v29  ;;  %v786_v24 = vand.u32 3, %v785_v41 }
 0x111   : > { %v926_v36 = vadd.f32 0.041655596, %v925_v52  ;;  %v933_v16 = vadd.f32 0.008332121, %v932_v7  ;;  %v449_v34 = vand.u32 2147483647, %v448_v26  ;;  %vm784_vm15 = vweird.f32 %v1891_v48 }
 0x112   : > { %v1783_v8 = vshrl.u32 %v585_v42, 30  ;;  %v783_v62 = vmul.f32 %v782_v40, %v767_v1  ;;  %v775_v17 = vadd.f32 1.0, %v774_v51  ;;  %v940_v0 = vadd.s32 3, %v923_v15 }
 0x113   : > { %v927_v49 = vmul.f32 %v926_v36, %v924_v38  ;;  %v934_v22 = vmul.f32 %v933_v16, %v924_v38  ;;  %v452_v35 = vmul.f32 %v451_v59, %v449_v34  ;;  %vm333_vm1 = vcmp.lt.s32.totalorder %v1900_v12, 0  ;;  %v957_v59 = vld [vmem:[%s1260_s15] sm:$0xff] }
 0x114   : > { %v587_v44 = vshll.u32 %v1783_v8, 30  ;;  %v789_v9 = vxor.u32 2147483648, %v783_v62  ;;  %v1901_v21 = vand.u32 2147483647, %v1900_v12  ;;  %vm788_vm11 = vcmp.eq.s32.totalorder %v786_v24, 0  ;;  %963 = vperm.xlu2 %1169, %v957_v59  }
 0x115   : > { %v928_v14 = vadd.f32 -0.4999988, %v927_v49  ;;  %v935_v57 = vadd.f32 -0.16666654, %v934_v22  ;;  %v453_v61 = vxor.u32 2147483648, %v452_v35  ;;  %v792_v53 = vxor.u32 2147483648, %v775_v17 }
 0x116   : > { %v588_v45 = vsub.s32 %v584_v3, %v587_v44  ;;  %vm1791_vm10 = vcmp.le.f32.partialorder %v1901_v21, 0.7853982  ;;  %v790_v27 = vsel %vm788_vm11, %v775_v17, %v789_v9  ;;  %v941_v11 = vand.u32 3, %v940_v0  ;;  %v1904_v22 = vld [vmem:[#allocation4_spill] sm:$0xff] }
 0x117   : > { %v929_v37 = vmul.f32 %v928_v14, %v924_v38  ;;  %v936_v1 = vmul.f32 %v935_v57, %v924_v38  ;;  %v454_v18 = vsel %vm333_vm1, %v453_v61, %v452_v35  ;;  %vm791_vm12 = vcmp.eq.s32.totalorder %v786_v24, 2 }
 0x118   : > { %vm589_vm14 = vcmp.lt.s32.totalorder %v588_v45, 0  ;;  %v590_v20 = vsub.s32 0, %v588_v45  ;;  %v1800_v54 = vsel %vm1791_vm10, %v1900_v12, %v454_v18  ;;  %vm787_vm2 = vcmp.lt.s32.totalorder %v786_v24, 2 }
 0x119   : > { %v930_v4 = vadd.f32 1.0, %v929_v37  ;;  %v937_v60 = vadd.f32 1.0, %v936_v1  ;;  %v459_v13 = vmul.f32 %v1800_v54, %v1800_v54  ;;  %v793_v19 = vsel %vm791_vm12, %v792_v53, %v783_v62 }
 0x11a   : > { %v591_v58 = vsel %vm589_vm14, %v590_v20, %v588_v45  ;;  %v794_v5 = vsel %vm787_vm2, %v790_v27, %v793_v19  ;;  %vm942_vm13 = vcmp.lt.s32.totalorder %v941_v11, 2  ;;  %vm943_vm3 = vcmp.eq.s32.totalorder %v941_v11, 0 }
 0x11b   : > { %v938_v56 = vmul.f32 %v937_v60, %v922_v25  ;;  %v947_v6 = vxor.u32 2147483648, %v930_v4  ;;  %v592_v28 = vclz %v591_v58  ;;  %vm946_vm5 = vcmp.eq.s32.totalorder %v941_v11, 2 }
 0x11c   : > { %v467_v46 = vmul.f32 -0.00019511016, %v459_v13  ;;  %vm939_vm6 = vweird.f32 %v1895_v55  ;;  %v580_v47 = vadd.s32 %v1759_v2, %v1750_v10  ;;  %v795_v50 = vsel %vm784_vm15, nan, %v794_v5 }
 0x11d   : > { %v944_v30 = vxor.u32 2147483648, %v938_v56  ;;  %v1122_v32 = vadd.s32 4294967294, %v592_v28  ;;  %v948_v23 = vsel %vm946_vm5, %v947_v6, %v938_v56  ;;  %v460_v55 = vmul.f32 -0.001358992, %v459_v13 }
 0x11e   : > { %v468_v7 = vadd.f32 0.008332121, %v467_v46  ;;  %v455_v62 = vsub.s32 4, %v1722_v31  ;;  %vm488_vm8 = vcmp.lt.s32.totalorder %v1904_v22, 0  ;;  %v1905_v35 = vand.u32 2147483647, %v1904_v22 }
 0x11f   : > { %v945_v43 = vsel %vm943_vm3, %v930_v4, %v944_v30  ;;  %vm1123_vm4 = vcmp.lt.s32.totalorder %v1122_v32, 0  ;;  %v461_v2 = vadd.f32 0.041655596, %v460_v55  ;;  %v610_v57 = vsub.s32 4, %v1783_v8  ;;  %v1147_v55 = vld [vmem:[%s236_s20 + $0x8] sm:$0xff] }
 0x120   : > { %v949_v25 = vsel %vm942_vm13, %v945_v43, %v948_v23  ;;  %v595_v38 = vsel %vm1123_vm4, 0, %v1122_v32  ;;  %v469_v40 = vmul.f32 %v468_v7, %v459_v13  ;;  %vm1815_vm7 = vcmp.le.f32.partialorder %v1905_v35, 0.7853982 }
 0x121   : > { %v950_v39 = vsel %vm939_vm6, nan, %v949_v25  ;;  %v596_v3 = vsub.s32 32, %v595_v38  ;;  %v600_v63 = vsub.s32 4294967266, %v595_v38  ;;  %v597_v41 = vshll.u32 %v588_v45, %v595_v38  ;;  %v958_v45 = vld [vmem:[%s1260_s15 + $0x8] sm:$0xff] }
 0x122   : > { %v956_v52 = vpack.c.bf16 %v950_v39, %v795_v50  ;;  %v470_v16 = vadd.f32 -0.16666654, %v469_v40  ;;  %v462_v15 = vmul.f32 %v461_v2, %v459_v13  ;;  %v456_v14 = vsel %vm333_vm1, %v455_v62, %v1722_v31  ;;  %968 = vperm.xlu2 %1169, %v958_v45  }
 0x123   : > { %v598_v29 = vshrl.u32 %v580_v47, %v596_v3  ;;  %v601_v26 = vadd.s32 127, %v600_v63  ;;  %v458_v37 = vsel %vm1791_vm10, 0, %v456_v14  ;;  %v611_v20 = vsel %vm488_vm8, %v610_v57, %v1783_v8 }
 0x124   : > { %1003 = vmatpush.bf16.msra.mxu1 %v956_v52  ;;  %1150 = vmatpush.bf16.msra.mxu3 %v956_v52  ;;  %v471_v24 = vmul.f32 %v470_v16, %v459_v13  ;;  %v463_v0 = vadd.f32 -0.4999988, %v462_v15  ;;  %v475_v60 = vadd.s32 3, %v458_v37  ;;  %v613_v11 = vsel %vm1815_vm7, 0, %v611_v20 }
 0x125   : > { %v599_v42 = vor.u32 %v598_v29, %v597_v41  ;;  %v602_v51 = vshll.u32 %v601_v26, 23  ;;  %v630_v30 = vadd.s32 3, %v613_v11  ;;  %vm474_vm12 = vweird.f32 %v1900_v12  ;;  %v1146_v26 = vld [vmem:[%s236_s20] sm:$0xff] }
 0x126   : > { %v472_v1 = vadd.f32 1.0, %v471_v24  ;;  %v464_v53 = vmul.f32 %v463_v0, %v459_v13  ;;  %v476_v19 = vand.u32 3, %v475_v60  ;;  %vm629_vm2 = vweird.f32 %v1904_v22 }
 0x127   : > { %v603_v10 = vor.u32 4788187, %v602_v51  ;;  %v606_v48 = vcvt.s32.f32 %v599_v42  ;;  %v631_v46 = vand.u32 3, %v630_v30  ;;  %vm1016_vm13 = vcmask 64512  }
 0x128   : > { %v473_v27 = vmul.f32 %v472_v1, %v1800_v54  ;;  %v465_v6 = vadd.f32 1.0, %v464_v53  ;;  %vm478_vm9 = vcmp.eq.s32.totalorder %v476_v19, 0  ;;  %vm481_vm1 = vcmp.eq.s32.totalorder %v476_v19, 2 }
 0x129   : > { %v604_v36 = vand.u32 2147483647, %v603_v10  ;;  %vm477_vm10 = vcmp.lt.s32.totalorder %v476_v19, 2  ;;  %vm633_vm11 = vcmp.eq.s32.totalorder %v631_v46, 0  ;;  %vm636_vm14 = vcmp.eq.s32.totalorder %v631_v46, 2 }
 0x12a   : > { %v479_v32 = vxor.u32 2147483648, %v473_v27  ;;  %v482_v13 = vxor.u32 2147483648, %v465_v6  ;;  %vm632_vm15 = vcmp.lt.s32.totalorder %v631_v46, 2 }
 0x12b   : > { %v607_v34 = vmul.f32 %v606_v48, %v604_v36  ;;  %v974_v36 = vpop.permute.xlu0 %973 }
 0x12c   : > { %v480_v54 = vsel %vm478_vm9, %v465_v6, %v479_v32  ;;  %v483_v38 = vsel %vm481_vm1, %v482_v13, %v473_v27 }
 0x12d   : > { %v608_v49 = vxor.u32 2147483648, %v607_v34  ;;  %v484_v39 = vsel %vm477_vm10, %v480_v54, %v483_v38 }
 0x12e   : > { %v485_v7 = vsel %vm474_vm12, nan, %v484_v39 }
 0x12f   : > { %v609_v17 = vsel %vm488_vm8, %v608_v49, %v607_v34  ;;  %v979_v34 = vpop.permute.xlu1 %978 }
 0x130   : > { %v612_v9 = vsel %vm1815_vm7, %v1904_v22, %v609_v17 }
 0x131   : > { %v614_v61 = vmul.f32 %v612_v9, %v612_v9 }
 0x133   : > { %v615_v21 = vmul.f32 -0.001358992, %v614_v61  ;;  %v622_v18 = vmul.f32 -0.00019511016, %v614_v61 }
 0x135   : > { %v616_v31 = vadd.f32 0.041655596, %v615_v21  ;;  %v623_v4 = vadd.f32 0.008332121, %v622_v18 }
 0x137   : > { %v617_v58 = vmul.f32 %v616_v31, %v614_v61  ;;  %v624_v56 = vmul.f32 %v623_v4, %v614_v61 }
 0x139   : > { %v618_v33 = vadd.f32 -0.4999988, %v617_v58  ;;  %v625_v28 = vadd.f32 -0.16666654, %v624_v56 }
 0x13b   : > { %v619_v8 = vmul.f32 %v618_v33, %v614_v61  ;;  %v626_v5 = vmul.f32 %v625_v28, %v614_v61 }
 0x13d   : > { %v620_v43 = vadd.f32 1.0, %v619_v8  ;;  %v627_v23 = vadd.f32 1.0, %v626_v5 }
 0x13f   : > { %v628_v25 = vmul.f32 %v627_v23, %v612_v9  ;;  %v637_v47 = vxor.u32 2147483648, %v620_v43 }
 0x141   : > { %v634_v50 = vxor.u32 2147483648, %v628_v25  ;;  %v638_v63 = vsel %vm636_vm14, %v637_v47, %v628_v25 }
 0x143   : > { %v635_v3 = vsel %vm633_vm11, %v620_v43, %v634_v50 }
 0x144   : > { %v639_v52 = vsel %vm632_vm15, %v635_v3, %v638_v63 }
 0x145   : > { %v640_v41 = vsel %vm629_vm2, nan, %v639_v52 }
 0x146   : > { %v955_v29 = vpack.c.bf16 %v640_v41, %v485_v7 }
 0x148   : > { %1004 = vmatpush.bf16.msra.mxu1 %v955_v29  ;;  %1151 = vmatpush.bf16.msra.mxu3 %v955_v29 }
 0x14b   : > { %1138 = vmatmul.msk.bf16.vlgmr.msra.gmra.mxu1 %vm305_vm0, %v1146_v26  ;;  %1139 = vmatmul.msk.bf16.vlgmr.msra.gmra.mxu3 %vm305_vm0, %v1147_v55 }
 0x16e   : > { %v964_v42 = vpop.permute.xlu2 %963 }
 0x17c   : > { %v969_v10 = vpop.permute.xlu2 %968 }
 0x1c8   : > { %v1006_v12 = vpop.f32.mrf.mxu1 }
 0x1c9   : > { %v1007_v51 = vadd.f32 %v1006_v12, %v964_v42 }
 0x1cb   : > { %1017 = vst.msk [vmem:[%s248_s24] sm:$0xff] %vm1016_vm13, %v1007_v51 }
 0x1ce   : > { %v1011_v40 = vpop.f32.mrf.mxu3 }
 0x1cf   : > { %v1012_v16 = vadd.f32 %v1011_v40, %v974_v36 }
 0x1d0   : > { %v1008_v2 = vpop.f32.mrf.mxu1 }
 0x1d1   : > { %v1009_v48 = vadd.f32 %v1008_v2, %v969_v10  ;;  %1019 = vst.msk [vmem:[%s248_s24 + $0x10] sm:$0xff] %vm1016_vm13, %v1012_v16 }
 0x1d3   : > { %1018 = vst.msk [vmem:[%s248_s24 + $0x8] sm:$0xff] %vm1016_vm13, %v1009_v48 }
 0x1d6   : > { %v1013_v59 = vpop.f32.mrf.mxu3 }
 0x1d7   : > { %v1014_v62 = vadd.f32 %v1013_v59, %v979_v34 }
 0x1d9   : > { %1020 = vst.msk [vmem:[%s248_s24 + $0x18] sm:$0xff] %vm1016_vm13, %v1014_v62 }
 0x1da PF: > { %s15_s18 = sadd.s32 1, %s1176_s18  }
 0x1db   : > { %p12_p4 = scmp.ge.s32.totalorder %s15_s18, 4  }
 0x1dd   :  { %14 = sbr.rel (!%p12_p4) target bundleno = 1 (0x1), region = 73 }

</bundles_post_ra>
